<compile_context>
chip_gen: v5e
topology: v5e:2x2
jax: 0.10.0
libtpu: 0.0.40
codegen_flags: <defaults>
</compile_context>

<pallas_src>
import functools

import jax
import jax.numpy as jnp
from jax.experimental import pallas as pl
from jax.experimental.pallas import tpu as pltpu

NEG_SLOPE = 0.2      # LeakyReLU negative_slope
BN_EPS = 1e-5        # nn.BatchNorm2d default eps
PCONV_EPS = 1e-8     # PartialConv2d denominator epsilon


def _round_up(x, m):
    return (x + m - 1) // m * m


def _pick_hw_tile(hw, max_lanes=2048):
    """Largest multiple of 128 dividing hw that is <= max_lanes (else hw)."""
    if hw <= max_lanes or hw % 128 != 0:
        return hw
    best = 128
    t = 128
    while t <= max_lanes:
        if hw % t == 0:
            best = t
        t += 128
    return best


def _pconv_kernel(cols_ref, w_ref, b_ref, y_ref, um_ref, s1_ref, *, Cout, winsize):
    """Partial conv for one (batch, HW-tile) grid step.

    cols_ref: (1, D, T) bf16   im2col columns, D = K*K*2*Cin; per-tap channel
                               order is [x*m | m]; T lanes (128-multiple or full).
    w_ref:    (CoutP, D) bf16  rows [0:Cout]: conv weights; row Cout: ones on
                               the mask-channel columns (window count); rest 0.
    b_ref:    (Cout, 1) f32    conv bias.
    y_ref:    (1, Cout, T) bf16  partial-conv output (pre-BN), NCHW-flat.
    um_ref:   (1, 1, T) f32      clamped update mask (single channel).
    s1_ref:   (1, 1, Cout, 1) f32 per-channel sum of y over this tile,
                               accumulated in f32 *before* the bf16 cast.
    """
    cols = cols_ref[0]                                               # (D, T)

    # One MXU push: conv output and mask window-sum in the same result tile.
    acc = jnp.dot(w_ref[...], cols, preferred_element_type=jnp.float32)  # (CoutP, T)
    conv = acc[:Cout, :]                                             # (Cout, T)
    msum = acc[Cout:Cout + 1, :]                                     # (1, T)

    um = jnp.clip(msum, 0.0, 1.0)
    # EUP approximate reciprocal: frees VPU cycles; ratio <= Cin*K*K so the
    # approximation error is negligible at the working precision.
    ratio = (winsize * pl.reciprocal(msum + PCONV_EPS, approx=True)) * um
    y = (conv * ratio + b_ref[...]) * um                             # (Cout, T) f32

    T = y.shape[1]
    y_ref[...] = y.astype(y_ref.dtype).reshape(1, Cout, T)
    um_ref[...] = um.reshape(1, 1, T)
    s1_ref[...] = jnp.sum(y, axis=1, keepdims=True).reshape(1, 1, Cout, 1)


@functools.partial(jax.jit, static_argnums=(5,))
def pconv_decoder_forward(img, mask_in, e_conv, e_mask, params, kernel_size):
    """NCHW in / NCHW out, matching PConvDecoder.forward (bn=True, act=True)."""
    K = kernel_size
    p = (K - 1) // 2

    # --- glue (fused by XLA inside this jit): nearest-2x upsample + concat ---
    up_img = jnp.repeat(jnp.repeat(img, 2, axis=2), 2, axis=3)
    up_mask = jnp.repeat(jnp.repeat(mask_in, 2, axis=2), 2, axis=3)
    x = jnp.concatenate([e_conv, up_img], axis=1).astype(jnp.float32)    # NCHW
    m = jnp.concatenate([e_mask, up_mask], axis=1).astype(jnp.float32)

    N, Cin, H, W = x.shape
    Cout = params["weight"].shape[0]
    C2 = 2 * Cin
    D = K * K * C2                            # im2col contraction depth
    CoutP = max(_round_up(Cout + 1, 8), 8)    # conv rows + mask-sum row, 8-aligned
    HW = H * W

    # x*m computed once; im2col columns (N, D, HW) laid out lane-dense so the
    # kernel streams 128-lane dense operands and stores unmasked lane-dense.
    comb = jnp.concatenate([x * m, m], axis=1)                       # (N, 2Cin, H, W)
    combp = jnp.pad(comb, ((0, 0), (0, 0), (p, p), (p, p)))
    taps = [combp[:, :, dy:dy + H, dx:dx + W]
            for dy in range(K) for dx in range(K)]                   # each (N, 2Cin, H, W)
    cols = jnp.stack(taps, axis=1).reshape(N, D, HW).astype(jnp.bfloat16)
    # TODO(synk): at large H*W the full im2col is ~K*K x the HBM read volume;
    # switch to K in-kernel row-concatenated matmuls (depth K*2Cin) or fuse the
    # upsample/concat/pad directly into the kernel read path instead.

    # Augmented weight (CoutP, D): conv rows + one all-ones mask-count row.
    w = params["weight"].astype(jnp.float32)                         # (Cout, Cin, K, K)
    w_taps = jnp.transpose(w, (0, 2, 3, 1)).reshape(Cout, K * K, Cin)
    w_aug = jnp.zeros((CoutP, K * K, C2), jnp.float32)
    w_aug = w_aug.at[:Cout, :, :Cin].set(w_taps)
    w_aug = w_aug.at[Cout, :, Cin:].set(1.0)                         # mask window-sum row
    w_aug = w_aug.reshape(CoutP, D).astype(jnp.bfloat16)

    b_col = params["bias"].reshape(Cout, 1).astype(jnp.float32)

    # Grid: batch x HW-tiles, both "parallel" (>=2 steps keeps both v7x TCs
    # busy; the HW tile bounds the per-step VMEM block at large resolutions).
    hw_t = _pick_hw_tile(HW)
    n_hw = HW // hw_t

    # VMEM budget from actual (double-buffered) block sizes, capped for v7x.
    blk_bytes = (2 * (D * hw_t * 2 + Cout * hw_t * 2 + hw_t * 4 + Cout * 4)
                 + 2 * (CoutP * D * 2 + Cout * 4))
    vmem_limit = int(min(max(4 * blk_bytes, 16 * 1024 * 1024), 48 * 1024 * 1024))

    kernel = functools.partial(_pconv_kernel, Cout=Cout,
                               winsize=float(Cin * K * K))

    y, um, s1 = pl.pallas_call(
        kernel,
        out_shape=(jax.ShapeDtypeStruct((N, Cout, HW), jnp.bfloat16),
                   jax.ShapeDtypeStruct((N, 1, HW), jnp.float32),
                   jax.ShapeDtypeStruct((N, n_hw, Cout, 1), jnp.float32)),
        grid_spec=pltpu.PrefetchScalarGridSpec(
            num_scalar_prefetch=0,
            grid=(N, n_hw),
            in_specs=[
                pl.BlockSpec((1, D, hw_t), lambda n, h: (n, 0, h)),
                pl.BlockSpec((CoutP, D), lambda n, h: (0, 0)),
                pl.BlockSpec((Cout, 1), lambda n, h: (0, 0)),
            ],
            out_specs=(
                pl.BlockSpec((1, Cout, hw_t), lambda n, h: (n, 0, h)),
                pl.BlockSpec((1, 1, hw_t), lambda n, h: (n, 0, h)),
                pl.BlockSpec((1, 1, Cout, 1), lambda n, h: (n, h, 0, 0)),
            ),
        ),
        compiler_params=pltpu.CompilerParams(
            dimension_semantics=("parallel", "parallel"),
            vmem_limit_bytes=vmem_limit),
    )(cols, w_aug, b_col)

    # BatchNorm2d (training mode, biased stats over N,H,W) + LeakyReLU(0.2),
    # XLA-fused with the final reshape / mask broadcast (a second pallas_call
    # here was pure launch overhead). Mean uses the exact in-kernel f32 sums;
    # variance uses a centered pass for numerical stability.
    count = float(N * HW)
    mean = jnp.sum(s1[..., 0], axis=(0, 1)) / count                   # (Cout,)
    y32 = y.astype(jnp.float32)                                       # (N, Cout, HW)
    var = jnp.mean((y32 - mean[None, :, None]) ** 2, axis=(0, 2))     # (Cout,)
    scale = params["gamma"].astype(jnp.float32) * jax.lax.rsqrt(var + BN_EPS)
    shift = params["beta"].astype(jnp.float32) - mean * scale

    out = y32 * scale[None, :, None] + shift[None, :, None]
    out = jnp.where(out >= 0, out, NEG_SLOPE * out)

    conv_out = out.reshape(N, Cout, H, W)                             # already NCHW
    mask_out = jnp.broadcast_to(um.reshape(N, 1, H, W), (N, Cout, H, W))
    return conv_out, mask_out


def _reference(img, mask_in, e_conv, e_mask, params, K):
    """Pure-JAX (f32, HIGHEST precision) reference of the same forward (NCHW)."""
    p = (K - 1) // 2
    up_img = jnp.repeat(jnp.repeat(img, 2, axis=2), 2, axis=3)
    up_mask = jnp.repeat(jnp.repeat(mask_in, 2, axis=2), 2, axis=3)
    x = jnp.concatenate([e_conv, up_img], axis=1)
    m = jnp.concatenate([e_mask, up_mask], axis=1)
    w, b = params["weight"], params["bias"]
    Cout, Cin = w.shape[0], w.shape[1]
    dn = ("NCHW", "OIHW", "NCHW")
    raw = jax.lax.conv_general_dilated(x * m, w, (1, 1), [(p, p), (p, p)],
                                       dimension_numbers=dn,
                                       precision=jax.lax.Precision.HIGHEST)
    msum = jax.lax.conv_general_dilated(m, jnp.ones_like(w), (1, 1),
                                        [(p, p), (p, p)], dimension_numbers=dn,
                                        precision=jax.lax.Precision.HIGHEST)
    slide = float(Cin * K * K)
    mask_ratio = slide / (msum + PCONV_EPS)
    update_mask = jnp.clip(msum, 0.0, 1.0)
    mask_ratio = mask_ratio * update_mask
    bv = b.reshape(1, Cout, 1, 1)
    out = raw * mask_ratio + bv
    out = out * update_mask
    mean = jnp.mean(out, axis=(0, 2, 3), keepdims=True)
    var = jnp.mean((out - mean) ** 2, axis=(0, 2, 3), keepdims=True)
    out = ((out - mean) * jax.lax.rsqrt(var + BN_EPS)
           * params["gamma"].reshape(1, Cout, 1, 1)
           + params["beta"].reshape(1, Cout, 1, 1))
    out = jnp.where(out >= 0, out, NEG_SLOPE * out)
    return out, update_mask


if __name__ == "__main__":
    # Small shapes: encoder features at 16x16, decoder input at 8x8.
    N = 2
    C_img, C_enc = 8, 8              # in_channels = C_img + C_enc = 16
    Cout = 8
    K = 3
    Hs = Ws = 8                      # img / mask_in spatial (upsampled to 16)

    key = jax.random.PRNGKey(0)
    k_img, k_econv, k_mask, k_emask, k_w, k_b, k_g, k_be = jax.random.split(key, 8)

    img = jax.random.normal(k_img, (N, C_img, Hs, Ws), jnp.float32)
    e_conv = jax.random.normal(k_econv, (N, C_enc, 2 * Hs, 2 * Ws), jnp.float32)
    mask_in = (jax.random.uniform(k_mask, (N, C_img, Hs, Ws)) > 0.4).astype(jnp.float32)
    e_mask = (jax.random.uniform(k_emask, (N, C_enc, 2 * Hs, 2 * Ws)) > 0.4).astype(jnp.float32)

    Cin = C_img + C_enc
    params = {
        "weight": 0.1 * jax.random.normal(k_w, (Cout, Cin, K, K), jnp.float32),
        "bias": 0.1 * jax.random.normal(k_b, (Cout,), jnp.float32),
        "gamma": 1.0 + 0.1 * jax.random.normal(k_g, (Cout,), jnp.float32),
        "beta": 0.1 * jax.random.normal(k_be, (Cout,), jnp.float32),
    }

    conv_out, mask_out = pconv_decoder_forward(img, mask_in, e_conv, e_mask,
                                               params, K)
    jax.block_until_ready((conv_out, mask_out))

    ref_conv, ref_mask = _reference(img, mask_in, e_conv, e_mask, params, K)
    assert conv_out.shape == (N, Cout, 2 * Hs, 2 * Ws)
    assert mask_out.shape == (N, Cout, 2 * Hs, 2 * Ws)
    # Mask window-sums are exact integers -> exact update mask.
    assert jnp.allclose(mask_out, ref_mask, atol=1e-6)
    # bf16 matmul inputs / bf16 y round-trip (f32 accumulation) -> loose tol.
    assert jnp.allclose(conv_out, ref_conv, atol=2e-2, rtol=2e-2)

    print("KERNEL_OK")
</pallas_src>

<mosaic_0001>
module attributes {stable_mosaic.version = 11 : i64} {
  func.func @_pconv_kernel(%arg0: i32, %arg1: i32, %arg2: memref<1x288x256xbf16, #tpu.memory_space<vmem>>, %arg3: memref<16x288xbf16, #tpu.memory_space<vmem>>, %arg4: memref<8x1xf32, #tpu.memory_space<vmem>>, %arg5: memref<1x8x256xbf16, #tpu.memory_space<vmem>>, %arg6: memref<1x1x256xf32, #tpu.memory_space<vmem>>, %arg7: memref<1x1x8x1xf32, #tpu.memory_space<vmem>>) attributes {dimension_semantics = [#tpu.dimension_semantics<parallel>, #tpu.dimension_semantics<parallel>], iteration_bounds = array<i64: 2, 1>, scalar_prefetch = 0 : i64, scratch_operands = 0 : i64, tpu.core_type = #tpu.core_type<tc>, window_params = [{transform_indices = @transform_0, window_bounds = array<i64: 1, 288, 256>}, {pipeline_mode = #tpu.pipeline_mode<synchronous>, transform_indices = @transform_1, window_bounds = array<i64: 16, 288>}, {pipeline_mode = #tpu.pipeline_mode<synchronous>, transform_indices = @transform_2, window_bounds = array<i64: 8, 1>}, {transform_indices = @transform_3, window_bounds = array<i64: 1, 8, 256>}, {transform_indices = @transform_4, window_bounds = array<i64: 1, 1, 256>}, {transform_indices = @transform_5, window_bounds = array<i64: 1, 1, 8, 1>}]} {
    %c0 = arith.constant 0 : index
    %c0_0 = arith.constant 0 : index
    %c0_1 = arith.constant 0 : index
    %0 = vector.load %arg2[%c0, %c0_0, %c0_1] : memref<1x288x256xbf16, #tpu.memory_space<vmem>>, vector<1x288x256xbf16>
    %1 = vector.shape_cast %0 : vector<1x288x256xbf16> to vector<288x256xbf16>
    %c0_2 = arith.constant 0 : index
    %c0_3 = arith.constant 0 : index
    %2 = vector.load %arg3[%c0_2, %c0_3] : memref<16x288xbf16, #tpu.memory_space<vmem>>, vector<16x288xbf16>
    %cst = arith.constant dense<0.000000e+00> : vector<16x256xf32>
    %3 = tpu.matmul %2, %1, %cst {dimension_numbers = #tpu.dot_dimension_numbers<[1], [0], [0], [1], [0, 0, 1, 1], [], []>} : vector<16x288xbf16>, vector<288x256xbf16>, vector<16x256xf32> -> vector<16x256xf32>
    %4 = vector.extract_strided_slice %3 {offsets = [0, 0], sizes = [8, 256], strides = [1, 1]} : vector<16x256xf32> to vector<8x256xf32>
    %5 = vector.extract_strided_slice %3 {offsets = [8, 0], sizes = [1, 256], strides = [1, 1]} : vector<16x256xf32> to vector<1x256xf32>
    %cst_4 = arith.constant 0.000000e+00 : f32
    %cst_5 = arith.constant 1.000000e+00 : f32
    %6 = vector.broadcast %cst_4 : f32 to vector<1x256xf32>
    %7 = arith.maximumf %6, %5 : vector<1x256xf32>
    %8 = vector.broadcast %cst_5 : f32 to vector<1x256xf32>
    %9 = arith.minimumf %8, %7 : vector<1x256xf32>
    %cst_6 = arith.constant 9.99999993E-9 : f32
    %10 = vector.broadcast %cst_6 : f32 to vector<1x256xf32>
    %11 = arith.addf %5, %10 : vector<1x256xf32>
    %12 = tpu.reciprocal %11 {approx = true} : vector<1x256xf32> -> vector<1x256xf32>
    %cst_7 = arith.constant 1.440000e+02 : f32
    %13 = vector.broadcast %cst_7 : f32 to vector<1x256xf32>
    %14 = arith.mulf %13, %12 : vector<1x256xf32>
    %15 = arith.mulf %14, %9 : vector<1x256xf32>
    %16 = vector.broadcast %15 : vector<1x256xf32> to vector<8x256xf32>
    %17 = arith.mulf %4, %16 : vector<8x256xf32>
    %c0_8 = arith.constant 0 : index
    %c0_9 = arith.constant 0 : index
    %18 = vector.load %arg4[%c0_8, %c0_9] : memref<8x1xf32, #tpu.memory_space<vmem>>, vector<8x1xf32>
    %19 = vector.broadcast %18 : vector<8x1xf32> to vector<8x256xf32>
    %20 = arith.addf %17, %19 : vector<8x256xf32>
    %21 = vector.broadcast %9 : vector<1x256xf32> to vector<8x256xf32>
    %22 = arith.mulf %20, %21 : vector<8x256xf32>
    %23 = arith.truncf %22 : vector<8x256xf32> to vector<8x256xbf16>
    %24 = vector.shape_cast %23 : vector<8x256xbf16> to vector<1x8x256xbf16>
    %c0_10 = arith.constant 0 : index
    %c0_11 = arith.constant 0 : index
    %c0_12 = arith.constant 0 : index
    %25 = vector.load %arg5[%c0_10, %c0_11, %c0_12] : memref<1x8x256xbf16, #tpu.memory_space<vmem>>, vector<1x8x256xbf16>
    tpu.vector_store %arg5[%c0_10, %c0_11, %c0_12], %24 {strides = array<i32>} : memref<1x8x256xbf16, #tpu.memory_space<vmem>>, vector<1x8x256xbf16>,
    %26 = vector.shape_cast %9 : vector<1x256xf32> to vector<1x1x256xf32>
    %c0_13 = arith.constant 0 : index
    %c0_14 = arith.constant 0 : index
    %c0_15 = arith.constant 0 : index
    %27 = vector.load %arg6[%c0_13, %c0_14, %c0_15] : memref<1x1x256xf32, #tpu.memory_space<vmem>>, vector<1x1x256xf32>
    tpu.vector_store %arg6[%c0_13, %c0_14, %c0_15], %26 {strides = array<i32>} : memref<1x1x256xf32, #tpu.memory_space<vmem>>, vector<1x1x256xf32>,
    %cst_16 = arith.constant dense<0.000000e+00> : vector<8xf32>
    %28 = vector.multi_reduction <add>, %22, %cst_16 [1] : vector<8x256xf32> to vector<8xf32>
    %29 = vector.shape_cast %28 : vector<8xf32> to vector<8x1xf32>
    %30 = vector.shape_cast %29 : vector<8x1xf32> to vector<1x1x8x1xf32>
    %c0_17 = arith.constant 0 : index
    %c0_18 = arith.constant 0 : index
    %c0_19 = arith.constant 0 : index
    %c0_20 = arith.constant 0 : index
    %31 = vector.load %arg7[%c0_17, %c0_18, %c0_19, %c0_20] : memref<1x1x8x1xf32, #tpu.memory_space<vmem>>, vector<1x1x8x1xf32>
    tpu.vector_store %arg7[%c0_17, %c0_18, %c0_19, %c0_20], %30 {strides = array<i32>} : memref<1x1x8x1xf32, #tpu.memory_space<vmem>>, vector<1x1x8x1xf32>,
    return
  }
  func.func @transform_0(%arg0: i32, %arg1: i32) -> (i32, i32, i32) {
    %c0_i32 = arith.constant 0 : i32
    %c0_i32_0 = arith.constant 0 : i32
    return %arg0, %c0_i32, %arg1 : i32, i32, i32
  }
  func.func @transform_1(%arg0: i32, %arg1: i32) -> (i32, i32) {
    %c0_i32 = arith.constant 0 : i32
    %c0_i32_0 = arith.constant 0 : i32
    %c0_i32_1 = arith.constant 0 : i32
    return %c0_i32, %c0_i32_0 : i32, i32
  }
  func.func @transform_2(%arg0: i32, %arg1: i32) -> (i32, i32) {
    %c0_i32 = arith.constant 0 : i32
    %c0_i32_0 = arith.constant 0 : i32
    %c0_i32_1 = arith.constant 0 : i32
    return %c0_i32, %c0_i32_0 : i32, i32
  }
  func.func @transform_3(%arg0: i32, %arg1: i32) -> (i32, i32, i32) {
    %c0_i32 = arith.constant 0 : i32
    %c0_i32_0 = arith.constant 0 : i32
    return %arg0, %c0_i32, %arg1 : i32, i32, i32
  }
  func.func @transform_4(%arg0: i32, %arg1: i32) -> (i32, i32, i32) {
    %c0_i32 = arith.constant 0 : i32
    %c0_i32_0 = arith.constant 0 : i32
    return %arg0, %c0_i32, %arg1 : i32, i32, i32
  }
  func.func @transform_5(%arg0: i32, %arg1: i32) -> (i32, i32, i32, i32) {
    %c0_i32 = arith.constant 0 : i32
    %c0_i32_0 = arith.constant 0 : i32
    %c0_i32_1 = arith.constant 0 : i32
    return %arg0, %arg1, %c0_i32, %c0_i32_0 : i32, i32, i32, i32
  }
}

</mosaic_0001>

<bundles_post_ra>
// kernel: pconv_decoder_forward.1
= control target key start
LH: loop header
LB: loop body
LE: loop exit
PB: predicated region body
PF: predicated region fallthrough
CT: control target
= control target key end

     0   :  { %s1142_s18 = smov 0   ;;  %s1144_s19 = smov 0   ;;  %s1287_s0 = inlined_call_operand.vmem [shape: bf16[2,288,256], index: 0, kind: input, shape index: {}]   ;;  %s1288_s1 = inlined_call_operand.vmem [shape: bf16[16,288], index: 1, kind: input, shape index: {}]   ;;  %s1289_s2 = inlined_call_operand.vmem [shape: f32[8,1], index: 2, kind: input, shape index: {}]   ;;  %s1290_s3 = inlined_call_operand.vmem [shape: bf16[2,8,256], index: 3, kind: output, shape index: {0}]   ;;  %s1291_s4 = inlined_call_operand.vmem [shape: f32[2,1,256], index: 4, kind: output, shape index: {1}]   ;;  %s1292_s5 = inlined_call_operand.vmem [shape: f32[2,1,8,1], index: 5, kind: output, shape index: {2}]  }
   0x1   :  { %s1146_s20 = smov 0  }
   0x2 LB: > { %s28_s21 = sadd.s32 1, %s1105_s19  ;;  %p850_p0 = scmp.ge.s32.totalorder %s1109_s20, 1  ;;  %s1109_s20 = sphi %s1146_s20, %s16_s20   ;;  %s1105_s19 = sphi %s1144_s19, %s1294_s19   ;;  %s1101_s18 = sphi %s1142_s18, %s1293_s18  }
   0x3   : > { %p30_p1 = scmp.ge.s32.totalorder %s28_s21, 2  ;;  %p217_p2 = scmp.lt.s32.totalorder %s1109_s20, 3 }
   0x5   : > { %s1296_s21 = smov (%p30_p1, %s28_s21), 0  ;;  %p218_p3 = pnand %p850_p0, %p217_p2 }
   0x6   : > { %p269_p4 = scmp.lt.s32.totalorder (!%p218_p3), %s1101_s18, 1 }
   0x7   : > { %221 = sbr.rel (%p218_p3) target bundleno = 344 (0x158), region = 32 }
   0xc   : > { %s1298_s18 = smov (!%p269_p4, %s1101_s18), 1  ;;  %vm540_vm0 = vcmask 261120   ;;  %v866_v12 = vld [vmem:[%s1288_s1 + $0x8] sm:$0xf]  ;;  %v1055_v13 = vld [vmem:[%s1288_s1 + $0x10] sm:$0xf0] }
   0xd   : > { %s1056_s22 = smul.u32 288, %s1298_s18  ;;  %v1198_v36 = vor.u32 %v1055_v13, %v866_v12  ;;  %s854_s15 = sshll.u32 %s1298_s18, 1  ;;  %vm661_vm1 = vcmask 1040384   ;;  %vm672_vm3 = vcmask 7168  }
   0xe   : > { %s1016_s23 = sshll.u32 %s1298_s18, 3 }
   0xf   : > { %s1166_s25 = scalar_lea.vmem %s1287_s0, %s1056_s22  ;;  %s295_s22 = scalar_lea.vmem %s1291_s4, %s854_s15 }
  0x10   : > { %v926_v0 = vld [vmem:[%s1166_s25 + $0x70] sm:$0xf]  ;;  %v1032_v1 = vld [vmem:[%s1166_s25 + $0x74] sm:$0xf0]  ;;  %v1031_v9 = vld [vmem:[%s1166_s25 + $0x74] sm:$0xf]  ;;  %s286_s26 = scalar_lea.vmem %s1290_s3, %s1016_s23  ;;  %s303_s29 = scalar_lea.vmem %s1292_s5, %s1016_s23 }
  0x11   : > { %v990_v2 = vld [vmem:[%s1166_s25 + $0xf0] sm:$0xf]  ;;  %v927_v3 = vor.u32 %v1032_v1, %v926_v0  ;;  %v1048_v4 = vld [vmem:[%s1166_s25 + $0xf4] sm:$0xf0]  ;;  %v928_v10 = vld [vmem:[%s1166_s25 + $0x78] sm:$0xf0] }
  0x12   : > { %v1006_v5 = vld [vmem:[%s1166_s25 + $0x110] sm:$0xf]  ;;  %v1052_v6 = vld [vmem:[%s1166_s25 + $0x114] sm:$0xf0]  ;;  %v991_v7 = vor.u32 %v1048_v4, %v990_v2  ;;  %v918_v11 = vld [vmem:[%s1166_s25 + $0x60] sm:$0xf]  ;;  %v931_v14 = vor.u32 %v1031_v9, %v928_v10 }
  0x13   : > { %v1007_v8 = vor.u32 %v1052_v6, %v1006_v5  ;;  %544 = vmatpush.bf16.msra.mxu0 %v927_v3  ;;  %v1030_v15 = vld [vmem:[%s1166_s25 + $0x64] sm:$0xf0]  ;;  %v982_v16 = vld [vmem:[%s1166_s25 + $0xe0] sm:$0xf]  ;;  %v1029_v22 = vld [vmem:[%s1166_s25 + $0x64] sm:$0xf] }
  0x14   : > { %v1046_v17 = vld [vmem:[%s1166_s25 + $0xe4] sm:$0xf0]  ;;  %558 = vmatpush.bf16.msra.mxu1 %v991_v7  ;;  %v919_v18 = vor.u32 %v1030_v15, %v918_v11  ;;  %v998_v20 = vld [vmem:[%s1166_s25 + $0x100] sm:$0xf]  ;;  %586 = vmatpush.bf16.msra.mxu3 %v931_v14  ;;  %v920_v24 = vld [vmem:[%s1166_s25 + $0x68] sm:$0xf0] }
  0x15   : > { %578 = vmatpush.bf16.msra.mxu2 %v1007_v8  ;;  %v983_v19 = vor.u32 %v1046_v17, %v982_v16  ;;  %v1050_v21 = vld [vmem:[%s1166_s25 + $0x104] sm:$0xf0]  ;;  %v1047_v25 = vld [vmem:[%s1166_s25 + $0xf4] sm:$0xf]  ;;  %v992_v26 = vld [vmem:[%s1166_s25 + $0xf8] sm:$0xf0]  ;;  %v923_v27 = vor.u32 %v1029_v22, %v920_v24 }
  0x16   : > { %v999_v23 = vor.u32 %v1050_v21, %v998_v20  ;;  %v995_v28 = vor.u32 %v1047_v25, %v992_v26  ;;  %v910_v29 = vld [vmem:[%s1166_s25 + $0x50] sm:$0xf]  ;;  %v1028_v30 = vld [vmem:[%s1166_s25 + $0x54] sm:$0xf0]  ;;  %v1027_v34 = vld [vmem:[%s1166_s25 + $0x54] sm:$0xf] }
  0x17   : > { %v974_v31 = vld [vmem:[%s1166_s25 + $0xd0] sm:$0xf]  ;;  %545 = vmatpush.bf16.msra.mxu0 %v919_v18  ;;  %v911_v32 = vor.u32 %v1028_v30, %v910_v29  ;;  %v1044_v33 = vld [vmem:[%s1166_s25 + $0xd4] sm:$0xf0]  ;;  %v912_v35 = vld [vmem:[%s1166_s25 + $0x58] sm:$0xf0] }
  0x18   : > { %559 = vmatpush.bf16.msra.mxu1 %v983_v19  ;;  %v975_v37 = vor.u32 %v1044_v33, %v974_v31  ;;  %v1045_v38 = vld [vmem:[%s1166_s25 + $0xe4] sm:$0xf]  ;;  %v984_v39 = vld [vmem:[%s1166_s25 + $0xe8] sm:$0xf0]  ;;  %v902_v40 = vld [vmem:[%s1166_s25 + $0x40] sm:$0xf]  ;;  %587 = vmatpush.bf16.msra.mxu3 %v923_v27  ;;  %v915_v41 = vor.u32 %v1027_v34, %v912_v35 }
  0x19   : > { %579 = vmatpush.bf16.msra.mxu2 %v999_v23  ;;  %v987_v42 = vor.u32 %v1045_v38, %v984_v39  ;;  %v1026_v43 = vld [vmem:[%s1166_s25 + $0x44] sm:$0xf0]  ;;  %v966_v44 = vld [vmem:[%s1166_s25 + $0xc0] sm:$0xf]  ;;  %v1025_v46 = vld [vmem:[%s1166_s25 + $0x44] sm:$0xf] }
  0x1a   : > { %v1042_v45 = vld [vmem:[%s1166_s25 + $0xc4] sm:$0xf0]  ;;  %v904_v47 = vld [vmem:[%s1166_s25 + $0x48] sm:$0xf0]  ;;  %v1043_v48 = vld [vmem:[%s1166_s25 + $0xd4] sm:$0xf]  ;;  %v903_v49 = vor.u32 %v1026_v43, %v902_v40 }
  0x1b   : > { %546 = vmatpush.bf16.msra.mxu0 %v911_v32  ;;  %v976_v50 = vld [vmem:[%s1166_s25 + $0xd8] sm:$0xf0]  ;;  %v967_v51 = vor.u32 %v1042_v45, %v966_v44  ;;  %v894_v52 = vld [vmem:[%s1166_s25 + $0x30] sm:$0xf]  ;;  %v1024_v53 = vld [vmem:[%s1166_s25 + $0x34] sm:$0xf0]  ;;  %v907_v54 = vor.u32 %v1025_v46, %v904_v47 }
  0x1c   : > { %1012 = vmatmul.msk.bf16.vlgmr.msra.gmra.mxu2 %vm540_vm0, %v1198_v36  ;;  %560 = vmatpush.bf16.msra.mxu1 %v975_v37  ;;  %v979_v55 = vor.u32 %v1043_v48, %v976_v50  ;;  %v958_v56 = vld [vmem:[%s1166_s25 + $0xb0] sm:$0xf]  ;;  %v1040_v57 = vld [vmem:[%s1166_s25 + $0xb4] sm:$0xf0]  ;;  %v1023_v58 = vld [vmem:[%s1166_s25 + $0x34] sm:$0xf]  ;;  %v895_v62 = vor.u32 %v1024_v53, %v894_v52 }
  0x1d   : > { %600 = vmatpush.bf16.msrb.mxu2 %v995_v28  ;;  %588 = vmatpush.bf16.msra.mxu3 %v915_v41  ;;  %v896_v59 = vld [vmem:[%s1166_s25 + $0x38] sm:$0xf0]  ;;  %v1041_v60 = vld [vmem:[%s1166_s25 + $0xc4] sm:$0xf]  ;;  %v968_v61 = vld [vmem:[%s1166_s25 + $0xc8] sm:$0xf0]  ;;  %v959_v63 = vor.u32 %v1040_v57, %v958_v56 }
  0x1e   : > { %v886_v0 = vld [vmem:[%s1166_s25 + $0x20] sm:$0xf]  ;;  %v1022_v1 = vld [vmem:[%s1166_s25 + $0x24] sm:$0xf0]  ;;  %v899_v2 = vor.u32 %v1023_v58, %v896_v59  ;;  %v971_v3 = vor.u32 %v1041_v60, %v968_v61  ;;  %v1021_v6 = vld [vmem:[%s1166_s25 + $0x24] sm:$0xf] }
  0x1f   : > { %547 = vmatpush.bf16.msra.mxu0 %v903_v49  ;;  %v950_v4 = vld [vmem:[%s1166_s25 + $0xa0] sm:$0xf]  ;;  %v1038_v5 = vld [vmem:[%s1166_s25 + $0xa4] sm:$0xf0]  ;;  %v888_v7 = vld [vmem:[%s1166_s25 + $0x28] sm:$0xf0]  ;;  %v887_v10 = vor.u32 %v1022_v1, %v886_v0 }
  0x20   : > { %561 = vmatpush.bf16.msra.mxu1 %v967_v51  ;;  %v1039_v8 = vld [vmem:[%s1166_s25 + $0xb4] sm:$0xf]  ;;  %v960_v9 = vld [vmem:[%s1166_s25 + $0xb8] sm:$0xf0]  ;;  %v951_v11 = vor.u32 %v1038_v5, %v950_v4  ;;  %v878_v12 = vld [vmem:[%s1166_s25 + $0x10] sm:$0xf]  ;;  %v891_v14 = vor.u32 %v1021_v6, %v888_v7 }
  0x21   : > { %601 = vmatpush.bf16.msrb.mxu2 %v987_v42  ;;  %589 = vmatpush.bf16.msra.mxu3 %v907_v54  ;;  %v1020_v13 = vld [vmem:[%s1166_s25 + $0x14] sm:$0xf0]  ;;  %v963_v15 = vor.u32 %v1039_v8, %v960_v9  ;;  %v942_v16 = vld [vmem:[%s1166_s25 + $0x90] sm:$0xf]  ;;  %v1019_v18 = vld [vmem:[%s1166_s25 + $0x14] sm:$0xf] }
  0x22   : > { %v1036_v17 = vld [vmem:[%s1166_s25 + $0x94] sm:$0xf0]  ;;  %v880_v19 = vld [vmem:[%s1166_s25 + $0x18] sm:$0xf0]  ;;  %v1037_v20 = vld [vmem:[%s1166_s25 + $0xa4] sm:$0xf]  ;;  %v879_v22 = vor.u32 %v1020_v13, %v878_v12  ;;  %v664_v13 = vlaneseq }
  0x23   : > { %548 = vmatpush.bf16.msra.mxu0 %v895_v62  ;;  %v952_v21 = vld [vmem:[%s1166_s25 + $0xa8] sm:$0xf0]  ;;  %v870_v23 = vld [vmem:[%s1166_s25] sm:$0xf]  ;;  %v1018_v24 = vld [vmem:[%s1166_s25 + $0x4] sm:$0xf0]  ;;  %v943_v25 = vor.u32 %v1036_v17, %v942_v16  ;;  %v883_v29 = vor.u32 %v1019_v18, %v880_v19 }
  0x24   : > { %562 = vmatpush.bf16.msra.mxu1 %v959_v63  ;;  %v934_v26 = vld [vmem:[%s1166_s25 + $0x80] sm:$0xf]  ;;  %v1034_v27 = vld [vmem:[%s1166_s25 + $0x84] sm:$0xf0]  ;;  %v1017_v28 = vld [vmem:[%s1166_s25 + $0x4] sm:$0xf]  ;;  %v955_v30 = vor.u32 %v1037_v20, %v952_v21  ;;  %v871_v39 = vor.u32 %v1018_v24, %v870_v23 }
  0x25   : > { %602 = vmatpush.bf16.msrb.mxu2 %v979_v55  ;;  %590 = vmatpush.bf16.msra.mxu3 %v899_v2  ;;  %v1051_v31 = vld [vmem:[%s1166_s25 + $0x114] sm:$0xf]  ;;  %v1008_v32 = vld [vmem:[%s1166_s25 + $0x118] sm:$0xf0]  ;;  %v644_v33 = vld [vmem:[%s1289_s2] sm:$0xff]  ;;  %v1111_v38 = vmov 0   ;;  %v935_v42 = vor.u32 %v1034_v27, %v934_v26 }
  0x26   : > { %v872_v34 = vld [vmem:[%s1166_s25 + $0x8] sm:$0xf0]  ;;  %v1035_v35 = vld [vmem:[%s1166_s25 + $0x94] sm:$0xf]  ;;  %v944_v37 = vld [vmem:[%s1166_s25 + $0x98] sm:$0xf0]  ;;  %1082 = vset.pattern.permute.xlu0 %v1111_v38  ;;  %v1011_v45 = vor.u32 %v1051_v31, %v1008_v32 }
  0x27   : > { %549 = vmatpush.bf16.msra.mxu0 %v887_v10  ;;  %v858_v40 = vld [vmem:[%s1288_s1] sm:$0xf]  ;;  %v1054_v41 = vld [vmem:[%s1288_s1 + $0x8] sm:$0xf0]  ;;  %647 = vperm.xlu0 %1082, %v644_v33   ;;  %v1053_v43 = vld [vmem:[%s1288_s1 + $0x4] sm:$0xf]  ;;  %v875_v46 = vor.u32 %v1017_v28, %v872_v34  ;;  %v947_v47 = vor.u32 %v1035_v35, %v944_v37 }
  0x28   : > { %563 = vmatpush.bf16.msra.mxu1 %v951_v11  ;;  %v860_v44 = vld [vmem:[%s1288_s1 + $0xc] sm:$0xf0]  ;;  %v1049_v48 = vld [vmem:[%s1166_s25 + $0x104] sm:$0xf]  ;;  %v1000_v49 = vld [vmem:[%s1166_s25 + $0x108] sm:$0xf0]  ;;  %v859_v50 = vor.u32 %v1054_v41, %v858_v40 }
  0x29   : > { %603 = vmatpush.bf16.msrb.mxu2 %v971_v3  ;;  %591 = vmatpush.bf16.msra.mxu3 %v891_v14  ;;  %v1033_v51 = vld [vmem:[%s1166_s25 + $0x84] sm:$0xf]  ;;  %v936_v52 = vld [vmem:[%s1166_s25 + $0x88] sm:$0xf0]  ;;  %v863_v53 = vor.u32 %v1053_v43, %v860_v44  ;;  %v1003_v54 = vor.u32 %v1049_v48, %v1000_v49  ;;  %vm666_vm2 = vcmp.lt.s32.totalorder %v664_v13, 256 }
  0x2a   : > { %v939_v55 = vor.u32 %v1033_v51, %v936_v52 }
  0x2b   : > { %550 = vmatpush.bf16.msra.mxu0 %v879_v22 }
  0x2c   : > { %564 = vmatpush.bf16.msra.mxu1 %v943_v25 }
  0x2d   : > { %604 = vmatpush.bf16.msrb.mxu2 %v963_v15  ;;  %592 = vmatpush.bf16.msra.mxu3 %v883_v29 }
  0x2f   : > { %551 = vmatpush.bf16.msra.mxu0 %v871_v39 }
  0x30   : > { %565 = vmatpush.bf16.msra.mxu1 %v935_v42 }
  0x31   : > { %605 = vmatpush.bf16.msrb.mxu2 %v955_v30  ;;  %593 = vmatpush.bf16.msra.mxu3 %v875_v46 }
  0x32   : > { %552 = vmatmul.bf16.vlgmr.msra.gmra.mxu0 %v859_v50 }
  0x33   : > { %620 = vmatpush.bf16.msrb.mxu0 %v1011_v45  ;;  %566 = vmatmul.bf16.vlgmr.msra.gmra.mxu1 %v863_v53 }
  0x34   : > { %594 = vmatmul.bf16.vlgmr.msra.gmra.mxu3 %v859_v50 }
  0x35   : > { %606 = vmatpush.bf16.msrb.mxu2 %v947_v47 }
  0x37   : > { %621 = vmatpush.bf16.msrb.mxu0 %v1003_v54 }
  0x39   : > { %607 = vmatpush.bf16.msrb.mxu2 %v939_v55 }
  0x3c   : > { %608 = vmatmul.bf16.vlgmr.msrb.gmra.mxu2 %v863_v53 }
  0x42   : > { %1013 = vmatmul.msk.bf16.vlgmr.msrb.gmra.mxu0 %vm540_vm0, %v1198_v36 }
  0x99   : > { %v648_v27 = vpop.permute.xlu0 %647 }
  0x9f   : > { %v581_v56 = vpop.f32.mrf.mxu2 }
  0xa7   : > { %v583_v59 = vpop.f32.mrf.mxu2 }
  0xaf   : > { %v553_v57 = vpop.f32.mrf.mxu0 }
  0xb0   : > { %v567_v58 = vpop.f32.mrf.mxu1 }
  0xb1   : > { %v568_v18 = vadd.f32 %v567_v58, %v553_v57 }
  0xb3   : > { %v582_v22 = vadd.f32 %v581_v56, %v568_v18 }
  0xb7   : > { %v555_v60 = vpop.f32.mrf.mxu0  ;;  %v595_v63 = vpop.f32.mrf.mxu3 }
  0xb8   : > { %v569_v61 = vpop.f32.mrf.mxu1 }
  0xb9   : > { %v570_v62 = vadd.f32 %v569_v61, %v555_v60 }
  0xbb   : > { %v584_v0 = vadd.f32 %v583_v59, %v570_v62 }
  0xbd   : > { %v632_v2 = vadd.f32 1e-08, %v584_v0  ;;  %v628_v8 = vmax.f32 %v584_v0, 0.0 }
  0xbf   : > { %v609_v1 = vpop.f32.mrf.mxu2  ;;  %v623_v3 = vpop.f32.mrf.mxu0  ;;  %1083 = vrcp.f32 %v632_v2  ;;  %v630_v14 = vmin.f32 %v628_v8, 1.0 }
  0xc0   : > { %v597_v5 = vpop.f32.mrf.mxu3  ;;  %v610_v23 = vadd.f32 %v609_v1, %v595_v63 }
  0xc1   : > { %v652_v33 = vperm.slane %v630_v14, 0 }
  0xc2   : > { %v624_v28 = vadd.f32 %v623_v3, %v610_v23 }
  0xc5   : > { %v1084_v6 = vpop.eup %1083 }
  0xc6   : > { %v636_v10 = vmul.f32 144.0, %v1084_v6 }
  0xc7   : > { %v611_v4 = vpop.f32.mrf.mxu2  ;;  %v625_v36 = vpop.f32.mrf.mxu0 }
  0xc8   : > { %v612_v7 = vadd.f32 %v611_v4, %v597_v5  ;;  %v638_v16 = vmul.f32 %v636_v10, %v630_v14 }
  0xca   : > { %v626_v9 = vadd.f32 %v625_v36, %v612_v7  ;;  %v640_v20 = vperm.slane %v638_v16, 0 }
  0xcc   : > { %v629_v11 = vmax.f32 %v626_v9, 0.0  ;;  %v633_v12 = vadd.f32 1e-08, %v626_v9  ;;  %v642_v26 = vmul.f32 %v640_v20, %v582_v22 }
  0xce   : > { %v631_v15 = vmin.f32 %v629_v11, 1.0  ;;  %1085 = vrcp.f32 %v633_v12  ;;  %v650_v31 = vadd.f32 %v648_v27, %v642_v26 }
  0xd0   : > { %v660_v17 = vrot.slane %v631_v15, 7  ;;  %v653_v34 = vperm.slane %v631_v15, 0  ;;  %v654_v35 = vmul.f32 %v652_v33, %v650_v31 }
  0xd2   : > { %v662_v19 = vsel %vm661_vm1, %v630_v14, %v660_v17 }
  0xd3   : > { %668 = vst.msk [vmem:[%s295_s22] sm:$0x3] %vm666_vm2, %v662_v19 }
  0xd4   : > { %v1086_v21 = vpop.eup %1085 }
  0xd5   : > { %v637_v24 = vmul.f32 144.0, %v1086_v21 }
  0xd7   : > { %v639_v25 = vmul.f32 %v637_v24, %v631_v15 }
  0xd9   : > { %v641_v29 = vperm.slane %v639_v25, 0 }
  0xdb   : > { %v643_v30 = vmul.f32 %v641_v29, %v624_v28 }
  0xdd   : > { %v651_v32 = vadd.f32 %v648_v27, %v643_v30 }
  0xdf   : > { %v655_v37 = vmul.f32 %v653_v34, %v651_v32 }
  0xe1   : > { %v669_v38 = vadd.f32 %v655_v37, %v654_v35  ;;  %v656_v39 = vpack.c.bf16 %v655_v37, %v654_v35 }
  0xe3   : > { %670 = vadd.xlane.f32.xlu0 %v669_v38  ;;  %657 = vst [vmem:[%s286_s26] sm:$0xff] %v656_v39 }
 0x156   : > { %v671_v40 = vpop.xlane.xlu0 %670 }
 0x157   : > { %673 = vst.msk [vmem:[%s303_s29] sm:$0xff] %vm672_vm3, %v671_v40 }
 0x158 PF: > { %s16_s20 = sadd.s32 1, %s1109_s20   ;;  %s1293_s18 = smov %s1105_s19 }
 0x159   : > { %p13_p5 = scmp.ge.s32.totalorder %s16_s20, 4   ;;  %s1294_s19 = smov %s1296_s21 }
 0x15b   :  { %15 = sbr.rel (!%p13_p5) target bundleno = 2 (0x2), region = 86 }

</bundles_post_ra>
